<compile_context>
chip_gen: v6e
topology: v6e:2x2x1
jax: 0.10.0
libtpu: 0.0.40
codegen_flags: <defaults>
</compile_context>

<pallas_src>
import functools

import jax
import jax.numpy as jnp
from jax.experimental import pallas as pl
from jax.experimental.pallas import tpu as pltpu


def _embed_kernel(ids_ref, emb_hbm, pos_ref, out_ref, tok_buf, sem, *, seq_len):
    """One (sequence-tile, batch) grid step.

    ids_ref : SMEM (B*S,) int32   -- all token ids (scalar-prefetched)
    emb_hbm : HBM/ANY (V, D)      -- full embedding table (never copied whole)
    pos_ref : VMEM (TS, D) f32    -- positional-encoding rows for this tile
    out_ref : VMEM (TS, D) f32
    tok_buf : VMEM (TS, D)        -- scratch gather destination
    sem     : DMA semaphore (shared by all row copies)
    """
    st = pl.program_id(0)          # sequence-tile index (outer)
    b = pl.program_id(1)           # batch index (inner)
    ts = tok_buf.shape[0]
    base = b * seq_len + st * ts

    # Issue one row-gather DMA per token. Every row has its own destination
    # slot, so all TS copies can be in flight at once on one semaphore.
    @pl.loop(0, ts)
    def _(r):
        tid = ids_ref[base + r]
        pltpu.make_async_copy(
            emb_hbm.at[pl.ds(tid, 1), :],     # (1, D) row in HBM
            tok_buf.at[pl.ds(r, 1), :],       # (1, D) row in VMEM
            sem,
        ).start()

    # Wait for all TS row copies (all copies have identical size, so reusing
    # a same-sized descriptor per wait on the shared semaphore is exact).
    @pl.loop(0, ts)
    def _(r):
        pltpu.make_async_copy(
            emb_hbm.at[pl.ds(0, 1), :],
            tok_buf.at[pl.ds(r, 1), :],
            sem,
        ).wait()

    out_ref[...] = tok_buf[...].astype(jnp.float32) + pos_ref[...]
    # TODO(synk): train-mode dropout (pltpu.prng_seed / prng_random_bits mask
    # + 1/(1-p) scale) is omitted; this reproduces eval() mode where
    # nn.Dropout is the identity.
    # TODO(synk): for very long sequences, double-buffer tok_buf across grid
    # steps so tile i+1's gather overlaps tile i's add/store.


def _choose_token_tile(s, cap=512):
    """Largest multiple of 8 that divides s, capped at `cap` (None if none)."""
    best = None
    ts = 8
    while ts <= min(s, cap):
        if s % ts == 0:
            best = ts
        ts += 8
    return best


def transformer_embedding(ids, emb_table, pos_table, *, ts=None):
    """ids: [B, S] int, emb_table: [V, D] f32, pos_table: [max_len, D] f32."""
    B, S = ids.shape
    V, D = emb_table.shape
    max_len = pos_table.shape[0]
    assert S <= max_len, "sequence length exceeds positional-encoding table"
    # TODO(synk): pad S (and mask the tail) instead of asserting, if ragged
    # sequence lengths are needed; (8,128) tiling requires S % 8 == 0 here.
    assert S % 8 == 0, "S must be a multiple of 8"

    if ts is None:
        ts = _choose_token_tile(S)
    assert ts is not None and S % ts == 0 and ts % 8 == 0
    n_seq_tiles = S // ts

    ids_flat = ids.astype(jnp.int32).reshape(B * S)   # SMEM scalar-prefetch arg
    kernel = functools.partial(_embed_kernel, seq_len=S)

    grid_spec = pltpu.PrefetchScalarGridSpec(
        num_scalar_prefetch=1,
        # Sequence tile is the OUTER axis: the pos block index depends only on
        # it, so the same (TS, D) pos tile is reused (no re-DMA) across the
        # inner batch axis.
        grid=(n_seq_tiles, B),
        in_specs=[
            # Embedding table stays in HBM; rows are gathered with manual DMA.
            pl.BlockSpec(memory_space=pl.ANY),
            # Dense positional-encoding tile for sequence tile st.
            pl.BlockSpec((ts, D), lambda st, b, ids: (st, 0)),
        ],
        out_specs=pl.BlockSpec((None, ts, D), lambda st, b, ids: (b, st, 0)),
        scratch_shapes=[
            pltpu.VMEM((ts, D), emb_table.dtype),   # gather destination
            pltpu.SemaphoreType.DMA,                # shared row-copy semaphore
        ],
    )

    return pl.pallas_call(
        kernel,
        out_shape=jax.ShapeDtypeStruct((B, S, D), jnp.float32),
        grid_spec=grid_spec,
        compiler_params=pltpu.CompilerParams(
            dimension_semantics=("parallel", "parallel"),
            vmem_limit_bytes=32 << 20,   # safe on v5e/v6e/v7x; footprint is tiny
        ),
    )(ids_flat, emb_table, pos_table)


def make_positional_encoding(d_model, max_len):
    pos = jnp.arange(max_len, dtype=jnp.float32)[:, None]          # [max_len, 1]
    _2i = jnp.arange(0, d_model, 2, dtype=jnp.float32)             # [d_model/2]
    angles = pos / jnp.power(10000.0, _2i / d_model)               # [max_len, d_model/2]
    enc = jnp.zeros((max_len, d_model), dtype=jnp.float32)
    enc = enc.at[:, 0::2].set(jnp.sin(angles))
    enc = enc.at[:, 1::2].set(jnp.cos(angles))
    return enc


def make_token_embedding(key, vocab_size, d_model, padding_idx=1):
    # nn.Embedding default init: N(0, 1); padding_idx row zeroed.
    table = jax.random.normal(key, (vocab_size, d_model), dtype=jnp.float32)
    table = table.at[padding_idx].set(0.0)
    return table


if __name__ == "__main__":
    vocab_size = 32
    d_model = 128
    max_len = 16
    B, S = 2, 8

    key = jax.random.PRNGKey(0)
    k_emb, k_ids = jax.random.split(key)

    emb_table = make_token_embedding(k_emb, vocab_size, d_model)
    pos_table = make_positional_encoding(d_model, max_len)
    ids = jax.random.randint(k_ids, (B, S), 0, vocab_size, dtype=jnp.int32)

    out = transformer_embedding(ids, emb_table, pos_table)
    out = jax.block_until_ready(out)

    # reference check (plain JAX)
    ref = emb_table[ids] + pos_table[:S][None, :, :]
    assert out.shape == (B, S, d_model)
    assert jnp.allclose(out, ref, atol=1e-6), "mismatch vs reference"

    print("KERNEL_OK")
</pallas_src>

<mosaic_0001>
module attributes {stable_mosaic.version = 11 : i64} {
  func.func @_embed_kernel(%arg0: i32, %arg1: i32, %arg2: memref<16xi32, #tpu.memory_space<smem>>, %arg3: memref<32x128xf32, #tpu.memory_space<any>>, %arg4: memref<8x128xf32, #tpu.memory_space<vmem>>, %arg5: memref<1x8x128xf32, #tpu.memory_space<vmem>>, %arg6: memref<8x128xf32, #tpu.memory_space<vmem>>, %arg7: memref<!tpu.dma_semaphore, #tpu.memory_space<semaphore_mem>>) attributes {dimension_semantics = [#tpu.dimension_semantics<parallel>, #tpu.dimension_semantics<parallel>], iteration_bounds = array<i64: 1, 2>, scalar_prefetch = 1 : i64, scratch_operands = 2 : i64, tpu.core_type = #tpu.core_type<tc>, window_params = [{}, {transform_indices = @transform_1, window_bounds = array<i64: 8, 128>}, {transform_indices = @transform_2, window_bounds = array<i64: 1, 8, 128>}]} {
    %c8_i32 = arith.constant 8 : i32
    %0 = arith.muli %arg1, %c8_i32 : i32
    %c8_i32_0 = arith.constant 8 : i32
    %1 = arith.muli %arg0, %c8_i32_0 : i32
    %2 = arith.addi %0, %1 : i32
    %c0_i32 = arith.constant 0 : i32
    %c8_i32_1 = arith.constant 8 : i32
    %3 = arith.addi %c0_i32, %c8_i32_1 : i32
    %c1_i32 = arith.constant 1 : i32
    scf.for %arg8 = %c0_i32 to %3 step %c1_i32  : i32 {
      %c1_i32_13 = arith.constant 1 : i32
      %11 = arith.muli %arg8, %c1_i32_13 : i32
      %c0_i32_14 = arith.constant 0 : i32
      %12 = arith.addi %c0_i32_14, %11 : i32
      %13 = arith.addi %2, %12 : i32
      %14 = arith.index_cast %13 : i32 to index
      %15 = memref.load %arg2[%14] : memref<16xi32, #tpu.memory_space<smem>>
      %c0_i32_15 = arith.constant 0 : i32
      %16 = tpu.memref_slice %arg3[%15, %c0_i32_15] : memref<32x128xf32, #tpu.memory_space<any>> -> memref<1x128xf32, #tpu.memory_space<any>>
      %c0_i32_16 = arith.constant 0 : i32
      %17 = tpu.memref_slice %arg6[%12, %c0_i32_16] : memref<8x128xf32, #tpu.memory_space<vmem>> -> memref<1x128xf32, #tpu.memory_space<vmem>>
      tpu.enqueue_dma source(%16 : memref<1x128xf32, #tpu.memory_space<any>>) target(%17 : memref<1x128xf32, #tpu.memory_space<vmem>>) target_semaphore(%arg7 : memref<!tpu.dma_semaphore, #tpu.memory_space<semaphore_mem>>)
    }
    %c8_i32_2 = arith.constant 8 : i32
    %c0_i32_3 = arith.constant 0 : i32
    %c8_i32_4 = arith.constant 8 : i32
    %4 = arith.addi %c0_i32_3, %c8_i32_4 : i32
    %c1_i32_5 = arith.constant 1 : i32
    scf.for %arg8 = %c0_i32_3 to %4 step %c1_i32_5  : i32 {
      %c1_i32_13 = arith.constant 1 : i32
      %11 = arith.muli %arg8, %c1_i32_13 : i32
      %c0_i32_14 = arith.constant 0 : i32
      %12 = arith.addi %c0_i32_14, %11 : i32
      %c0_i32_15 = arith.constant 0 : i32
      %c0_i32_16 = arith.constant 0 : i32
      %13 = tpu.memref_slice %arg3[%c0_i32_15, %c0_i32_16] : memref<32x128xf32, #tpu.memory_space<any>> -> memref<1x128xf32, #tpu.memory_space<any>>
      %c0_i32_17 = arith.constant 0 : i32
      %14 = tpu.memref_slice %arg6[%12, %c0_i32_17] : memref<8x128xf32, #tpu.memory_space<vmem>> -> memref<1x128xf32, #tpu.memory_space<vmem>>
      tpu.wait_dma2 semaphore(%arg7 : memref<!tpu.dma_semaphore, #tpu.memory_space<semaphore_mem>>) src(%13 : memref<1x128xf32, #tpu.memory_space<any>>) dst(%14 : memref<1x128xf32, #tpu.memory_space<vmem>>)
    }
    %c8_i32_6 = arith.constant 8 : i32
    %c0 = arith.constant 0 : index
    %c0_7 = arith.constant 0 : index
    %5 = vector.load %arg6[%c0, %c0_7] : memref<8x128xf32, #tpu.memory_space<vmem>>, vector<8x128xf32>
    %c0_8 = arith.constant 0 : index
    %c0_9 = arith.constant 0 : index
    %6 = vector.load %arg4[%c0_8, %c0_9] : memref<8x128xf32, #tpu.memory_space<vmem>>, vector<8x128xf32>
    %7 = arith.addf %5, %6 : vector<8x128xf32>
    %c0_10 = arith.constant 0 : index
    %c0_11 = arith.constant 0 : index
    %c0_12 = arith.constant 0 : index
    %8 = vector.load %arg5[%c0_10, %c0_11, %c0_12] : memref<1x8x128xf32, #tpu.memory_space<vmem>>, vector<1x8x128xf32>
    %9 = vector.shape_cast %8 : vector<1x8x128xf32> to vector<8x128xf32>
    %10 = vector.shape_cast %7 : vector<8x128xf32> to vector<1x8x128xf32>
    tpu.vector_store %arg5[%c0_10, %c0_11, %c0_12], %10 {strides = array<i32>} : memref<1x8x128xf32, #tpu.memory_space<vmem>>, vector<1x8x128xf32>,
    return
  }
  func.func @transform_1(%arg0: i32, %arg1: i32, %arg2: memref<16xi32, #tpu.memory_space<smem>>) -> (i32, i32) {
    %c0_i32 = arith.constant 0 : i32
    %c0_i32_0 = arith.constant 0 : i32
    return %arg0, %c0_i32 : i32, i32
  }
  func.func @transform_2(%arg0: i32, %arg1: i32, %arg2: memref<16xi32, #tpu.memory_space<smem>>) -> (i32, i32, i32) {
    %c0_i32 = arith.constant 0 : i32
    %c0_i32_0 = arith.constant 0 : i32
    return %arg1, %arg0, %c0_i32 : i32, i32, i32
  }
}

</mosaic_0001>

<bundles_post_ra>
// kernel: tpu_custom_call.1
= control target key start
LH: loop header
LB: loop body
LE: loop exit
PB: predicated region body
PF: predicated region fallthrough
CT: control target
= control target key end

     0   :  { %s532_s12 = smov [#allocation5]   ;;  %s713_s0 = inlined_call_operand.hbm [shape: s32[16], index: 0, kind: input, shape index: {}]   ;;  %s714_s1 = inlined_call_operand.hbm [shape: f32[32,128], index: 1, kind: input, shape index: {}]   ;;  %s715_s2 = inlined_call_operand.hbm [shape: f32[16,128], index: 2, kind: input, shape index: {}]   ;;  %s716_s3 = inlined_call_operand.hbm [shape: f32[2,8,128], index: 3, kind: output, shape index: {}]  }
   0x1   :  { %9 = dma.hbm_to_smem %s713_s0, 16, %s532_s12, [#allocation4] }
   0x2   :  { %488 = dma.done.wait [#allocation4], 16 }
   0x3   :  { %489 = vsyncadd [#allocation4], 4294967280 }
   0x4   :  { %11 = sfence }
   0x5   :  { %12 = vsyncpa [#allocation7], 0 }
   0x6   :  { %13 = vsyncpa [#allocation8], 0 }
   0x7   :  { %15 = vsyncpa [#allocation8 + $0x1], 0  ;;  %s559_s15 = smov 0   ;;  %s561_s16 = smov 0  }
   0x8   :  { %s563_s17 = smov 0   ;;  %s565_s18 = smov 0  }
   0x9   :  { %s567_s19 = smov 0   ;;  %s569_s20 = smov 0  }
   0xa LB: > { %s277_s0 = sadd.s32 4294967295, %s522_s20   ;;  %s278_s21 = sadd.s32 4294967294, %s522_s20   ;;  %s522_s20 = sphi %s569_s20, %s21_s20   ;;  %s518_s19 = sphi %s567_s19, %s727_s19   ;;  %s514_s18 = sphi %s565_s18, %s726_s18   ;;  %s510_s17 = sphi %s563_s17, %s725_s17   ;;  %s506_s16 = sphi %s561_s16, %s724_s16   ;;  %s502_s15 = sphi %s559_s15, %s723_s15  }
   0xb   : > { %s30_s22 = sadd.s32 1, %s518_s19  ;;  %s68_s23 = sadd.s32 1, %s510_s17 }
   0xc   : > { %p31_p0 = scmp.ge.s32.totalorder %s30_s22, 2  ;;  %p78_p1 = scmp.ne.s32.totalorder %s510_s17, %s506_s16 }
   0xd   : > { %p79_p2 = scmp.eq.s32.totalorder %s277_s0, 1  ;;  %p84_p3 = scmp.ne.s32.totalorder %s506_s16, %s502_s15 }
   0xe   : > { %s729_s22 = smov (%p31_p0, %s30_s22), 0  ;;  %p85_p5 = scmp.eq.s32.totalorder %s278_s21, 1 }
   0xf   : > { %p599_p4 = por %p79_p2, %p78_p1  ;;  %s63_s25 = ssub.s32 %s518_s19, %s729_s22 }
  0x10   : > { %p279_p6 = scmp.ge.s32.totalorder %s522_s20, 1  ;;  %p66_p7 = scmp.eq.s32.totalorder %s63_s25, 0 }
  0x11   : > { %p606_p8 = por %p85_p5, %p84_p3  ;;  %p92_p9 = scmp.lt.s32.totalorder %s522_s20, 3 }
  0x12   : > { %s612_s27 = scalar_select %p66_p7, %s510_s17, %s68_s23  }
  0x13   : > { %p614_p10 = pnand %p279_p6, %p92_p9  ;;  %p618_p11 = scmp.eq.s32.totalorder %s277_s0, 0 }
  0x14   : > { %s533_s30 = smov [#allocation6]  }
  0x15   : > { %p297_p12 = pneg %p614_p10  ;;  %s107_s4 = sshll.u32 %s533_s30, 4  ;;  %s108_s4 = int_to_ptr.vmem [resolvable:$true] %s107_s4 }
  0x16   : > { %s393_s5 = scalar_lea.vmem %s108_s4, 128  ;;  %p401_p5 = scmp.lt.s32.totalorder %s108_s4, %s108_s4 }
  0x17   : > { %p298_p13 = pnand %p618_p11, %p297_p12  ;;  %p394_p1 = scmp.ne.s32.totalorder %s108_s4, %s393_s5 }
  0x18   : > { %p402_p6 = scmp.lt.s32.totalorder %s393_s5, %s393_s5 }
  0x19   : > { %p384_p0 = pneg %p298_p13 }
  0x1a   : > { %p403_p7 = por %p402_p6, %p401_p5 }
  0x1b   : > { %p396_p2 = pnand %p394_p1, %p384_p0 }
  0x1d   : > { %p397_p3 = pneg %p396_p2 }
  0x1f   : > { %p404_p9 = pnand %p403_p7, %p397_p3 }
  0x21   : > { %407 = shalt.err (!%p404_p9)
}
  0x22   : > { %300 = dma.hbm_to_vmem [thread:$0]  (!%p298_p13), %s715_s2, 128, %s108_s4, [#allocation7]  }
  0x23   : > { %120 = sbr.rel (%p614_p10) target bundleno = 108 (0x6c), region = 24 }
  0x28   : > { %491 = dma.done.wait (%p618_p11), [#allocation7], 128  }
  0x29   : > { %493 = vsyncadd (%p618_p11), [#allocation7], 4294967168  ;;  %s717_s8 = sand.u32 1, %s506_s16   ;;  %s284_s9 = sshll.u32 %s514_s18, 3 }
  0x2a   : > { %s639_s10 = sshll.u32 %s717_s8, 3  ;;  %s642_s12 = smov 0  }
  0x2b   : > { %s134_s11 = scalar_lea.vmem [#allocation9], %s639_s10 }
  0x2c LB: >> { %s144_s13 = sadd.s32 %s526_s12, %s284_s9  ;;  %s148_s0 = scalar_lea.vmem [#allocation2], %s526_s12  ;;  %s526_s12 = sphi %s642_s12, %s143_s12  }
  0x2d   : >> { %s145_s14 = sld [smem:[#allocation5 + %s144_s13]]  ;;  %s156_s21 = sshll.u32 %s148_s0, 4  ;;  %s157_s21 = int_to_ptr.vmem [resolvable:$true] %s156_s21 }
  0x2e   : >> { %s410_s6 = scalar_lea.hbm %s714_s1, 512 }
  0x33   : >> { %s285_s23 = sshll.u32 %s145_s14, 4 }
  0x34   : >> { %s147_s29 = scalar_lea.hbm %s714_s1, %s285_s23 }
  0x35   : >> { %s408_s30 = scalar_lea.hbm %s147_s29, 16  ;;  %p411_p11 = scmp.lt.s32.totalorder %s147_s29, %s714_s1 }
  0x36   : >> { %p409_p10 = scmp.ne.s32.totalorder %s147_s29, %s408_s30  ;;  %p412_p12 = scmp.lt.s32.totalorder %s410_s6, %s408_s30 }
  0x38   : >> { %p413_p13 = por %p412_p12, %p411_p11 }
  0x3a   : >> { %p414_p0 = pnand %p413_p13, %p409_p10 }
  0x3c   : >> { %417 = shalt.err (!%p414_p0)  }
  0x3d   : >> { %s418_s13 = scalar_lea.vmem %s157_s21, 16  ;;  %s534_s14 = smov [#allocation2]  }
  0x3e   : >> { %p419_p1 = scmp.ne.s32.totalorder %s157_s21, %s418_s13  ;;  %s420_s0 = sshll.u32 %s534_s14, 4  ;;  %s421_s0 = int_to_ptr.vmem [resolvable:$false] %s420_s0 }
  0x3f   : >> { %s422_s23 = scalar_lea.vmem %s421_s0, 128  ;;  %p423_p2 = scmp.lt.s32.totalorder %s157_s21, %s421_s0 }
  0x40   : >> { %p424_p3 = scmp.lt.s32.totalorder %s422_s23, %s418_s13 }
  0x42   : >> { %p425_p5 = por %p424_p3, %p423_p2 }
  0x44   : >> { %p426_p6 = pnand %p425_p5, %p419_p1 }
  0x46   : >> { %429 = shalt.err (!%p426_p6)  }
  0x47   : >> { %159 = dma.hbm_to_vmem [thread:$0]  %s147_s29, 16, %s157_s21, [#allocation3] }
  0x48   : >> { %s143_s12 = sadd.s32 1, %s526_s12  }
  0x49   : >> { %p140_p7 = scmp.ge.s32.totalorder %s143_s12, 8  }
  0x4a   : > { %s528_s8 = smov (%p140_p7), 0  }
  0x4b   : > { %142 = sbr.rel (!%p140_p7) target bundleno = 44 (0x2c), region = 82 }
  0x50 LB: >> { %494 = dma.done.wait [#allocation3], 16  ;;  %s530_s8 = sphi %s528_s8, %s165_s8  }
  0x51   : >> { %495 = vsyncadd [#allocation3], 4294967280  ;;  %s165_s8 = sadd.s32 1, %s530_s8  }
  0x52   : >> { %p162_p9 = scmp.ge.s32.totalorder %s165_s8, 8  }
  0x53   : > { %v169_v0 = vld [vmem:[#allocation2] sm:$0xff] (%p162_p9)  ;;  %v170_v1 = vld [vmem:[#allocation6] sm:$0xff] (%p162_p9)  ;;  %s287_s21 = sshll.u32 (%p162_p9), %s514_s18, 7  ;;  %s188_s28 = sshll.u32 (%p162_p9), %s134_s11, 4  ;;  %s189_s28 = int_to_ptr.vmem [resolvable:$true] %s188_s28 }
  0x54   : > { %164 = sbr.rel (!%p162_p9) target bundleno = 80 (0x50), region = 93  ;;  %v171_v2 = vadd.f32 (%p162_p9), %v170_v1, %v169_v0  ;;  %s667_s25 = scalar_lea.hbm (%p162_p9), %s716_s3, %s287_s21 }
  0x55   : > { %s722_s29 = sand.u32 (%p162_p9), 1, %s506_s16   ;;  %s430_s4 = scalar_lea.vmem (%p162_p9), %s189_s28, 128 }
  0x56   : > { %172 = vst [vmem:[%s134_s11] sm:$0xff] (%p162_p9), %v171_v2  ;;  %s174_s30 = scalar_lea.sflag (%p162_p9), [#allocation8], %s722_s29  ;;  %p431_p10 = scmp.ne.s32.totalorder (%p162_p9), %s189_s28, %s430_s4 }
  0x57   : > { %s535_s5 = smov (%p162_p9), [#allocation9]  }
  0x58   : > { %p432_p11 = pnand (%p162_p9), %p431_p10, %p599_p4  ;;  %s434_s18 = sshll.u32 (%p162_p9), %s535_s5, 4  ;;  %s435_s18 = int_to_ptr.vmem [resolvable:$false] %s434_s18 }
  0x59   : > { %s436_s6 = scalar_lea.vmem %s435_s18, 256  ;;  %p437_p13 = scmp.lt.s32.totalorder %s189_s28, %s435_s18 }
  0x5a   : > { %p433_p12 = pneg %p432_p11  ;;  %p438_p0 = scmp.lt.s32.totalorder %s436_s6, %s430_s4 }
  0x5c   : > { %p439_p1 = por %p438_p0, %p437_p13 }
  0x5e   : > { %p440_p2 = pnand %p439_p1, %p433_p12 }
  0x60   : > { %443 = shalt.err (!%p440_p2)
}
  0x61   : > { %s444_s10 = scalar_lea.hbm %s667_s25, 128  ;;  %s448_s13 = scalar_lea.hbm %s716_s3, 256 }
  0x62   : > { %p445_p3 = scmp.ne.s32.totalorder %s667_s25, %s444_s10  ;;  %p449_p7 = scmp.lt.s32.totalorder %s667_s25, %s716_s3 }
  0x63   : > { %p450_p9 = scmp.lt.s32.totalorder %s448_s13, %s444_s10 }
  0x64   : > { %p446_p5 = pnand %p445_p3, %p599_p4 }
  0x65   : > { %p451_p10 = por %p450_p9, %p449_p7 }
  0x66   : > { %p447_p6 = pneg %p446_p5 }
  0x68   : > { %p452_p11 = pnand %p451_p10, %p447_p6 }
  0x6a   : > { %455 = shalt.err (!%p452_p11)
}
  0x6b   : > { %295 = dma.vmem_to_hbm [thread:$0]  (%p599_p4), %s189_s28, 128, %s667_s25, %s174_s30  }
  0x6c PF: > { %p307_p12 = scmp.ge.s32.totalorder %s522_s20, 2  ;;  %s200_s23 = sand.u32 1, %s502_s15  }
  0x6d   : > { %s201_s8 = scalar_lea.sflag [#allocation8], %s200_s23 }
  0x6e   : > { %p302_p13 = pnand %p307_p12, %p606_p8 }
  0x70   : > { %p303_p0 = pneg %p302_p13 }
  0x72   : > { %497 = dma.done.wait (%p303_p0), %s201_s8, 128  }
  0x73   : > { %499 = vsyncadd (%p303_p0), %s201_s8, 4294967168  ;;  %s21_s20 = sadd.s32 1, %s522_s20   ;;  %s723_s15 = smov %s506_s16 }
  0x74   : > { %p18_p1 = scmp.ge.s32.totalorder %s21_s20, 4   ;;  %s724_s16 = smov %s510_s17 }
  0x75   : > { %s725_s17 = smov %s612_s27  ;;  %s726_s18 = smov %s518_s19 }
  0x76   : > { %s727_s19 = smov %s729_s22  ;;  %20 = sbr.rel (!%p18_p1) target bundleno = 10 (0xa), region = 104 }
  0x7b   :  { %206 = vsyncpa [#allocation7], 1 }
  0x7c   :  { %208 = vsyncpa [#allocation7 + $0x1], 1 }
  0x7d   :  { %209 = vsyncpa [#allocation8], 1 }
  0x7e   :  { %211 = vsyncpa [#allocation8 + $0x1], 1 }
  0x7f   :  { %212 = vsyncmov [#allocation3] }
  0x82   :  { %s213_s24 = vpop.sfrf %212 }
  0x83   :  { %p290_p4 = scmp.ne.s32.totalorder %s213_s24, 0 }
  0x85   :  { %217 = shalt.err (%p290_p4)  }

</bundles_post_ra>
